<compile_context>
chip_gen: v7x
topology: tpu7x:2x2x1
jax: 0.10.0
libtpu: 0.0.40
codegen_flags: <defaults>
</compile_context>

<pallas_src>
import functools

import numpy as np
import jax
import jax.numpy as jnp
from jax.experimental import pallas as pl
from jax.experimental.pallas import tpu as pltpu

QUBITS = 4            # the torch module hard-codes 4 (upper_diff = 4 - target)
DIM = 2 ** QUBITS     # 16
FLAT = DIM * DIM      # 256 -> two full 128-lane vregs per output row
# 0-indexed qubit pairs, same ordering as the module's qubit_tuples / upper_triag
PAIRS = [(i, j) for i in range(QUBITS) for j in range(i + 1, QUBITS)]   # 6 pairs


def _round_up(n, m):
    return ((n + m - 1) // m) * m


# ----------------------------------------------------------------------------
# Pallas kernel: one batch tile per grid step, lane-dense flattened output.
# ----------------------------------------------------------------------------
def _rzrzz_kernel(x_ref, out_ref):
    # x_ref:   (TB, 4)        f32  rotation angles
    # out_ref: (2, TB, 256)   f32  stacked (real, imag) flattened diagonal unitaries
    x = x_ref[...]                                    # (TB, 4)
    tb = x.shape[0]

    # Flattened (16,16) index k = 16*row + col, built once from a lane iota.
    k = jax.lax.broadcasted_iota(jnp.int32, (1, FLAT), 1)     # (1, 256)
    col = k & (DIM - 1)
    row = k >> 4
    eye = (row == col).astype(jnp.float32)            # (1, 256) flattened identity

    # Z-sign rows s_q(col) = 1 - 2*bit_q(col) in {+1,-1}; on the diagonal col==row==m.
    signs = [1.0 - 2.0 * ((col >> q) & 1).astype(jnp.float32) for q in range(QUBITS)]

    # z_q[b, k] = x[b, q] * s_q(k): 4 hoisted lane broadcasts, reused below.
    z = [jnp.broadcast_to(x[:, q:q + 1], (tb, FLAT)) * signs[q] for q in range(QUBITS)]

    # phase[b, k] = -0.5 * ( sum_q z_q  +  sum_{i<j} z_i z_j )   (unrolled VPU FMAs)
    acc = z[0] + z[1] + z[2] + z[3]                   # RZ (single-qubit) terms
    for (i, j) in PAIRS:                              # RZZ (pairwise) terms
        acc = acc + z[i] * z[j]
    phase = -0.5 * acc                                # (TB, 256)

    # diag(exp(1j*phase)) in flattened form: mask cos/sin with the identity.
    out_ref[0] = eye * jnp.cos(phase)                 # real plane (TB, 256)
    out_ref[1] = eye * jnp.sin(phase)                 # imag plane (TB, 256)


@functools.partial(jax.jit, static_argnames=("block_b", "return_complex"))
def rzrzz_forward(x, block_b=1024, return_complex=True):
    """x: (B, 4) float32 -> (B, 16, 16) complex64, matching RZRZZ.forward.

    block_b tuning: v5e <= 2048, v7x ~2048-4096, v6e up to 8192 (raise
    vmem_limit_bytes via pltpu.CompilerParams if you push it higher).
    """
    x = x.astype(jnp.float32)
    B = x.shape[0]

    # Batch tile: multiple of 8 sublanes; pad B so the grid divides evenly.
    tb = min(block_b, _round_up(B, 8))
    b_pad = _round_up(B, tb)
    if b_pad != B:
        x = jnp.pad(x, ((0, b_pad - B), (0, 0)))      # padded rows -> identity, sliced off

    planes = pl.pallas_call(
        _rzrzz_kernel,
        out_shape=jax.ShapeDtypeStruct((2, b_pad, FLAT), jnp.float32),
        grid_spec=pltpu.PrefetchScalarGridSpec(
            num_scalar_prefetch=0,
            grid=(b_pad // tb,),
            in_specs=[pl.BlockSpec((tb, QUBITS), lambda b: (b, 0))],
            out_specs=pl.BlockSpec((2, tb, FLAT), lambda b: (0, b, 0)),
        ),
        compiler_params=pltpu.CompilerParams(
            dimension_semantics=("parallel",)),        # shards across TCs on v7x
    )(x)

    planes = planes[:, :B].reshape(2, B, DIM, DIM)     # free, contiguous reshape
    if return_complex:
        # Pallas TPU has no complex dtype: recombine the split planes here.
        return jax.lax.complex(planes[0], planes[1])
    return planes                                      # (2, B, 16, 16) f32, no extra HBM pass


# ----------------------------------------------------------------------------
# Plain numpy transcription of the torch forward (ground truth for the check).
# ----------------------------------------------------------------------------
def _bin_list(num, length):
    return [int(b) for b in format(num, "0{}b".format(length))]


def _rzz_diag(control, target):
    """Mirror of RZRZZ.get_RZZ_static for a 1-indexed (control < target) pair."""
    diff = target - control
    upper_diff = 4 - target                      # torch hard-codes 4 here
    core = np.array([-1j, 1j, 1j, -1j], dtype=np.complex64)
    op = np.kron(core, np.ones(2 ** (control - 1), dtype=np.complex64))
    if diff > 1:
        half = op.shape[0] // 2
        scaler = np.ones(2 ** (diff - 1), dtype=np.complex64)
        upper = np.kron(scaler, op[:half])
        lower = np.kron(scaler, op[half:])
        op = (np.kron(np.array([1.0, 0.0]), upper)
              + np.kron(np.array([0.0, 1.0]), lower))
    if upper_diff > 0:
        op = np.kron(np.ones(2 ** upper_diff, dtype=np.complex64), op)
    return op.astype(np.complex64)               # (16,), entries +-1j


def _rz_static():
    """Mirror of RZRZZ.get_static_RZ: (16, 4) sign matrix with entries +-1."""
    binary = np.array([_bin_list(x, QUBITS) for x in range(DIM)], dtype=np.float32)
    binary = binary[::-1, ::-1]                  # torch.flip(dims=(-1, -2))
    return (-np.ones((DIM, QUBITS), np.float32) + 2.0 * binary).astype(np.float32)


def rzrzz_reference(x):
    x = np.asarray(x, np.float64)
    B = x.shape[0]
    rzz_diags = np.stack([_rzz_diag(i + 1, j + 1) for (i, j) in PAIRS]).astype(np.complex128)
    rz_static = _rz_static().astype(np.float64)
    upper_triag = [1, 2, 3, 6, 7, 11]            # torch's upper_triag buffer
    rot_mul = np.matmul(x[:, :, None], x[:, None, :]).reshape(B, -1)[:, upper_triag]
    tmp_diag = np.exp(rot_mul[:, :, None] / 2.0 * rzz_diags[None, :, :])      # (B,6,16)
    eye = np.eye(DIM, dtype=np.complex128)
    ops = tmp_diag[:, :, :, None] * eye[None, None, :, :]                     # (B,6,16,16)
    unitary_rzz = ops[:, -1]
    for i in range(ops.shape[1] - 1):
        unitary_rzz = np.matmul(unitary_rzz, ops[:, ops.shape[1] - 2 - i])
    rot = x / (2.0 * 1j)
    unitary_rz = np.exp(np.sum(rz_static[None, :, :] * rot[:, None, :], axis=-1))
    unitary_rz = unitary_rz[:, :, None] * eye[None, :, :]
    return np.matmul(unitary_rzz, unitary_rz)                                  # (B,16,16)


if __name__ == "__main__":
    key = jax.random.PRNGKey(0)
    B = 2
    # nn input: (batch, qubits) real rotation angles
    x = jax.random.normal(key, (B, QUBITS), dtype=jnp.float32)

    y = rzrzz_forward(x)
    y = jax.block_until_ready(y)

    y_ref = rzrzz_reference(np.asarray(x))
    # f32 phases + on-device sin/cos vs float64 reference.
    np.testing.assert_allclose(np.asarray(y), y_ref, rtol=1e-4, atol=1e-4)
    print("KERNEL_OK")
</pallas_src>

<mosaic_0001>
module attributes {stable_mosaic.version = 11 : i64} {
  func.func @_rzrzz_kernel(%arg0: i32, %arg1: memref<8x4xf32, #tpu.memory_space<vmem>>, %arg2: memref<2x8x256xf32, #tpu.memory_space<vmem>>) attributes {dimension_semantics = [#tpu.dimension_semantics<parallel>], iteration_bounds = array<i64: 1>, scalar_prefetch = 0 : i64, scratch_operands = 0 : i64, tpu.core_type = #tpu.core_type<tc>, window_params = [{transform_indices = @transform_0, window_bounds = array<i64: 8, 4>}, {transform_indices = @transform_1, window_bounds = array<i64: 2, 8, 256>}]} {
    %c0 = arith.constant 0 : index
    %c0_0 = arith.constant 0 : index
    %0 = vector.load %arg1[%c0, %c0_0] : memref<8x4xf32, #tpu.memory_space<vmem>>, vector<8x4xf32>
    %1 = tpu.iota {dimensions = array<i32: 1>} : vector<1x256xi32>
    %c15_i32 = arith.constant 15 : i32
    %2 = vector.broadcast %c15_i32 : i32 to vector<1x256xi32>
    %3 = arith.andi %1, %2 : vector<1x256xi32>
    %c4_i32 = arith.constant 4 : i32
    %4 = vector.broadcast %c4_i32 : i32 to vector<1x256xi32>
    %5 = arith.shrsi %1, %4 : vector<1x256xi32>
    %6 = arith.cmpi eq, %5, %3 : vector<1x256xi32>
    %7 = arith.extui %6 : vector<1x256xi1> to vector<1x256xi32>
    %8 = arith.sitofp %7 : vector<1x256xi32> to vector<1x256xf32>
    %c0_i32 = arith.constant 0 : i32
    %9 = vector.broadcast %c0_i32 : i32 to vector<1x256xi32>
    %10 = arith.shrsi %3, %9 : vector<1x256xi32>
    %c1_i32 = arith.constant 1 : i32
    %11 = vector.broadcast %c1_i32 : i32 to vector<1x256xi32>
    %12 = arith.andi %10, %11 : vector<1x256xi32>
    %13 = arith.sitofp %12 : vector<1x256xi32> to vector<1x256xf32>
    %cst = arith.constant 2.000000e+00 : f32
    %14 = vector.broadcast %cst : f32 to vector<1x256xf32>
    %15 = arith.mulf %14, %13 : vector<1x256xf32>
    %cst_1 = arith.constant 1.000000e+00 : f32
    %16 = vector.broadcast %cst_1 : f32 to vector<1x256xf32>
    %17 = arith.subf %16, %15 : vector<1x256xf32>
    %c1_i32_2 = arith.constant 1 : i32
    %18 = vector.broadcast %c1_i32_2 : i32 to vector<1x256xi32>
    %19 = arith.shrsi %3, %18 : vector<1x256xi32>
    %c1_i32_3 = arith.constant 1 : i32
    %20 = vector.broadcast %c1_i32_3 : i32 to vector<1x256xi32>
    %21 = arith.andi %19, %20 : vector<1x256xi32>
    %22 = arith.sitofp %21 : vector<1x256xi32> to vector<1x256xf32>
    %cst_4 = arith.constant 2.000000e+00 : f32
    %23 = vector.broadcast %cst_4 : f32 to vector<1x256xf32>
    %24 = arith.mulf %23, %22 : vector<1x256xf32>
    %cst_5 = arith.constant 1.000000e+00 : f32
    %25 = vector.broadcast %cst_5 : f32 to vector<1x256xf32>
    %26 = arith.subf %25, %24 : vector<1x256xf32>
    %c2_i32 = arith.constant 2 : i32
    %27 = vector.broadcast %c2_i32 : i32 to vector<1x256xi32>
    %28 = arith.shrsi %3, %27 : vector<1x256xi32>
    %c1_i32_6 = arith.constant 1 : i32
    %29 = vector.broadcast %c1_i32_6 : i32 to vector<1x256xi32>
    %30 = arith.andi %28, %29 : vector<1x256xi32>
    %31 = arith.sitofp %30 : vector<1x256xi32> to vector<1x256xf32>
    %cst_7 = arith.constant 2.000000e+00 : f32
    %32 = vector.broadcast %cst_7 : f32 to vector<1x256xf32>
    %33 = arith.mulf %32, %31 : vector<1x256xf32>
    %cst_8 = arith.constant 1.000000e+00 : f32
    %34 = vector.broadcast %cst_8 : f32 to vector<1x256xf32>
    %35 = arith.subf %34, %33 : vector<1x256xf32>
    %c3_i32 = arith.constant 3 : i32
    %36 = vector.broadcast %c3_i32 : i32 to vector<1x256xi32>
    %37 = arith.shrsi %3, %36 : vector<1x256xi32>
    %c1_i32_9 = arith.constant 1 : i32
    %38 = vector.broadcast %c1_i32_9 : i32 to vector<1x256xi32>
    %39 = arith.andi %37, %38 : vector<1x256xi32>
    %40 = arith.sitofp %39 : vector<1x256xi32> to vector<1x256xf32>
    %cst_10 = arith.constant 2.000000e+00 : f32
    %41 = vector.broadcast %cst_10 : f32 to vector<1x256xf32>
    %42 = arith.mulf %41, %40 : vector<1x256xf32>
    %cst_11 = arith.constant 1.000000e+00 : f32
    %43 = vector.broadcast %cst_11 : f32 to vector<1x256xf32>
    %44 = arith.subf %43, %42 : vector<1x256xf32>
    %45 = vector.extract_strided_slice %0 {offsets = [0, 0], sizes = [8, 1], strides = [1, 1]} : vector<8x4xf32> to vector<8x1xf32>
    %46 = vector.shape_cast %45 : vector<8x1xf32> to vector<8x1xf32>
    %47 = vector.broadcast %46 : vector<8x1xf32> to vector<8x256xf32>
    %48 = vector.broadcast %17 : vector<1x256xf32> to vector<8x256xf32>
    %49 = arith.mulf %47, %48 : vector<8x256xf32>
    %50 = vector.extract_strided_slice %0 {offsets = [0, 1], sizes = [8, 1], strides = [1, 1]} : vector<8x4xf32> to vector<8x1xf32>
    %51 = vector.shape_cast %50 : vector<8x1xf32> to vector<8x1xf32>
    %52 = vector.broadcast %51 : vector<8x1xf32> to vector<8x256xf32>
    %53 = vector.broadcast %26 : vector<1x256xf32> to vector<8x256xf32>
    %54 = arith.mulf %52, %53 : vector<8x256xf32>
    %55 = vector.extract_strided_slice %0 {offsets = [0, 2], sizes = [8, 1], strides = [1, 1]} : vector<8x4xf32> to vector<8x1xf32>
    %56 = vector.shape_cast %55 : vector<8x1xf32> to vector<8x1xf32>
    %57 = vector.broadcast %56 : vector<8x1xf32> to vector<8x256xf32>
    %58 = vector.broadcast %35 : vector<1x256xf32> to vector<8x256xf32>
    %59 = arith.mulf %57, %58 : vector<8x256xf32>
    %60 = vector.extract_strided_slice %0 {offsets = [0, 3], sizes = [8, 1], strides = [1, 1]} : vector<8x4xf32> to vector<8x1xf32>
    %61 = vector.shape_cast %60 : vector<8x1xf32> to vector<8x1xf32>
    %62 = vector.broadcast %61 : vector<8x1xf32> to vector<8x256xf32>
    %63 = vector.broadcast %44 : vector<1x256xf32> to vector<8x256xf32>
    %64 = arith.mulf %62, %63 : vector<8x256xf32>
    %65 = arith.addf %49, %54 : vector<8x256xf32>
    %66 = arith.addf %65, %59 : vector<8x256xf32>
    %67 = arith.addf %66, %64 : vector<8x256xf32>
    %68 = arith.mulf %49, %54 : vector<8x256xf32>
    %69 = arith.addf %67, %68 : vector<8x256xf32>
    %70 = arith.mulf %49, %59 : vector<8x256xf32>
    %71 = arith.addf %69, %70 : vector<8x256xf32>
    %72 = arith.mulf %49, %64 : vector<8x256xf32>
    %73 = arith.addf %71, %72 : vector<8x256xf32>
    %74 = arith.mulf %54, %59 : vector<8x256xf32>
    %75 = arith.addf %73, %74 : vector<8x256xf32>
    %76 = arith.mulf %54, %64 : vector<8x256xf32>
    %77 = arith.addf %75, %76 : vector<8x256xf32>
    %78 = arith.mulf %59, %64 : vector<8x256xf32>
    %79 = arith.addf %77, %78 : vector<8x256xf32>
    %cst_12 = arith.constant -5.000000e-01 : f32
    %80 = vector.broadcast %cst_12 : f32 to vector<8x256xf32>
    %81 = arith.mulf %80, %79 : vector<8x256xf32>
    %82 = math.cos %81 : vector<8x256xf32>
    %83 = vector.broadcast %8 : vector<1x256xf32> to vector<8x256xf32>
    %84 = arith.mulf %83, %82 : vector<8x256xf32>
    %c0_13 = arith.constant 0 : index
    %c0_14 = arith.constant 0 : index
    %c0_15 = arith.constant 0 : index
    %85 = vector.load %arg2[%c0_13, %c0_14, %c0_15] : memref<2x8x256xf32, #tpu.memory_space<vmem>>, vector<1x8x256xf32>
    %86 = vector.shape_cast %85 : vector<1x8x256xf32> to vector<8x256xf32>
    %87 = vector.shape_cast %84 : vector<8x256xf32> to vector<1x8x256xf32>
    tpu.vector_store %arg2[%c0_13, %c0_14, %c0_15], %87 {strides = array<i32>} : memref<2x8x256xf32, #tpu.memory_space<vmem>>, vector<1x8x256xf32>,
    %88 = math.sin %81 : vector<8x256xf32>
    %89 = vector.broadcast %8 : vector<1x256xf32> to vector<8x256xf32>
    %90 = arith.mulf %89, %88 : vector<8x256xf32>
    %c1 = arith.constant 1 : index
    %c0_16 = arith.constant 0 : index
    %c0_17 = arith.constant 0 : index
    %91 = vector.load %arg2[%c1, %c0_16, %c0_17] : memref<2x8x256xf32, #tpu.memory_space<vmem>>, vector<1x8x256xf32>
    %92 = vector.shape_cast %91 : vector<1x8x256xf32> to vector<8x256xf32>
    %93 = vector.shape_cast %90 : vector<8x256xf32> to vector<1x8x256xf32>
    tpu.vector_store %arg2[%c1, %c0_16, %c0_17], %93 {strides = array<i32>} : memref<2x8x256xf32, #tpu.memory_space<vmem>>, vector<1x8x256xf32>,
    return
  }
  func.func @transform_0(%arg0: i32) -> (i32, i32) {
    %c0_i32 = arith.constant 0 : i32
    %c0_i32_0 = arith.constant 0 : i32
    return %arg0, %c0_i32 : i32, i32
  }
  func.func @transform_1(%arg0: i32) -> (i32, i32, i32) {
    %c0_i32 = arith.constant 0 : i32
    %c0_i32_0 = arith.constant 0 : i32
    %c0_i32_1 = arith.constant 0 : i32
    return %c0_i32, %arg0, %c0_i32_0 : i32, i32, i32
  }
}

</mosaic_0001>

<bundles_post_ra>
// kernel: squeeze.2
= control target key start
LH: loop header
LB: loop body
LE: loop exit
PB: predicated region body
PF: predicated region fallthrough
CT: control target
= control target key end

     0   :  { %vm11_vm0 = vcmask 130048   ;;  %s77_s10 = smov 80   ;;  %s78_s15 = smov 96   ;;  %s135_s0 = inlined_call_operand.vmem [shape: f32[1,2,256], index: 0, kind: input, shape index: {}]   ;;  %s136_s1 = inlined_call_operand.vmem [shape: f32[2,16,16], index: 1, kind: output, shape index: {}]  }
   0x1   :  { %v60_v0 = vld [vmem:[%s135_s0 + $0x2] sm:$0x3]  ;;  %v8_v1 = vld [vmem:[%s135_s0] sm:$0x3]  ;;  %s76_s0 = smov 112   ;;  %s79_s16 = smov 64  }
   0x2   :  { %7 = vst [vmem:[#allocation0 + $0x8] sm:$0x3] %v60_v0  ;;  %9 = vst [vmem:[#allocation0] sm:$0x3] %v8_v1  ;;  %s80_s17 = smov 48   ;;  %s81_s18 = smov 32  }
   0x3   :  { %s82_s19 = smov 16  }
   0x9   :  { %v18_v2 = vld.sshfl [vmem:[#allocation0] sm:$0xff pattern:$0x99999180]  }
   0xa   :  { %v10_v3 = vld [vmem:[#allocation0] sm:$0x3]   ;;  %19 = vrot.lane.b32.xlu0 %v18_v2, %s76_s0  ;;  %31 = vrot.lane.b32.xlu1 %v18_v2, %s77_s10  ;;  %v14_v4 = vld [vmem:[#allocation0 + $0x8] sm:$0x3]  }
   0xb   :  { %12 = vst.msk [vmem:[%s136_s1] ss:$16 sm:$0x3] %vm11_vm0, %v10_v3   ;;  %61 = vst.msk [vmem:[%s136_s1 + $0x8] ss:$16 sm:$0x3] %vm11_vm0, %v14_v4  }
   0xe   :  { %25 = vrot.lane.b32.xlu0 %v18_v2, %s78_s15  ;;  %37 = vrot.lane.b32.xlu1 %v18_v2, %s79_s16 }
  0x12   :  { %43 = vrot.lane.b32.xlu0 %v18_v2, %s80_s17  ;;  %49 = vrot.lane.b32.xlu1 %v18_v2, %s81_s18 }
  0x16   :  { %55 = vrot.lane.b32.xlu0 %v18_v2, %s82_s19 }
  0x7c   :  { %v20_v5 = vpop.permute.xlu0 %19   ;;  %v32_v6 = vpop.permute.xlu1 %31  }
  0x7d   :  { %62 = vst.msk [vmem:[%s136_s1 + $0x1] ss:$8 sm:$0xf] %vm11_vm0, %v20_v5   ;;  %64 = vst.msk [vmem:[%s136_s1 + $0x3] ss:$8 sm:$0xf] %vm11_vm0, %v32_v6  }
  0x80   :  { %v26_v7 = vpop.permute.xlu0 %25   ;;  %v38_v8 = vpop.permute.xlu1 %37  }
  0x81   :  { %63 = vst.msk [vmem:[%s136_s1 + $0x2] ss:$8 sm:$0xf] %vm11_vm0, %v26_v7   ;;  %65 = vst.msk [vmem:[%s136_s1 + $0x4] ss:$8 sm:$0xf] %vm11_vm0, %v38_v8  }
  0x84   :  { %v44_v9 = vpop.permute.xlu0 %43   ;;  %v50_v10 = vpop.permute.xlu1 %49  }
  0x85   :  { %66 = vst.msk [vmem:[%s136_s1 + $0x5] ss:$8 sm:$0xf] %vm11_vm0, %v44_v9   ;;  %67 = vst.msk [vmem:[%s136_s1 + $0x6] ss:$8 sm:$0xf] %vm11_vm0, %v50_v10  }
  0x88   :  { %v56_v11 = vpop.permute.xlu0 %55  }
  0x89   :  { %68 = vst.msk [vmem:[%s136_s1 + $0x7] ss:$8 sm:$0xf] %vm11_vm0, %v56_v11  }

// kernel: custom-call
= control target key start
LH: loop header
LB: loop body
LE: loop exit
PB: predicated region body
PF: predicated region fallthrough
CT: control target
= control target key end

     0   :  { %s126_s0 = inlined_call_operand.vmem [shape: f32[2,16,16], index: 0, kind: input, shape index: {}]   ;;  %s127_s1 = inlined_call_operand.vmem [shape: f32[2,16,16], index: 1, kind: input, shape index: {}]   ;;  %s128_s2 = inlined_call_operand.hbm [shape: c64[2,16,16], index: 2, kind: output, shape index: {}]  }
   0x1   :  { %s87_s11 = scalar_lea.hbm %s128_s2, 512 }
   0x2   :  { %4 = vsyncpa [#allocation0], 0  ;;  %s5_s14 = sshll.u32 %s126_s0, 4  ;;  %s6_s14 = int_to_ptr.vmem [resolvable:$true] %s5_s14 }
   0x3   :  { %s18_s15 = scalar_lea.vmem %s6_s14, 512  ;;  %p23_p1 = scmp.lt.s32.totalorder %s6_s14, %s6_s14 }
   0x4   :  { %p19_p0 = scmp.ne.s32.totalorder %s6_s14, %s18_s15  ;;  %p24_p2 = scmp.lt.s32.totalorder %s18_s15, %s18_s15 }
   0x6   :  { %p25_p3 = por %p24_p2, %p23_p1 }
   0x8   :  { %p26_p4 = pnand %p25_p3, %p19_p0 }
   0xa   :  { %29 = shalt.err (!%p26_p4)  }
   0xb   :  { %p31_p5 = scmp.ne.s32.totalorder %s128_s2, %s87_s11  ;;  %s32_s0 = scalar_lea.hbm %s128_s2, 1024 }
   0xc   :  { %p33_p6 = scmp.lt.u32.totalorder %s32_s0, %s87_s11  ;;  %p34_p7 = scmp.lt.u32.totalorder %s87_s11, %s128_s2 }
   0xe   :  { %p35_p8 = por %p34_p7, %p33_p6 }
  0x10   :  { %p36_p9 = pnand %p35_p8, %p31_p5 }
  0x12   :  { %39 = shalt.err (!%p36_p9)  }
  0x13   :  { %8 = dma.vmem_to_hbm [thread:$0]  %s6_s14, 512, %s128_s2, [#allocation0] }
  0x14   :  { %65 = dma.done.wait [#allocation0], 512  }
  0x15   :  { %66 = vsyncadd [#allocation0], 4294966784 }
  0x16   :  { %10 = vsyncpa [#allocation0], 1 }
  0x17   :  { %11 = vsyncpa [#allocation1], 0  ;;  %s12_s28 = sshll.u32 %s127_s1, 4  ;;  %s13_s28 = int_to_ptr.vmem [resolvable:$true] %s12_s28 }
  0x18   :  { %s40_s29 = scalar_lea.vmem %s13_s28, 512  ;;  %p45_p11 = scmp.lt.s32.totalorder %s13_s28, %s13_s28 }
  0x19   :  { %p41_p10 = scmp.ne.s32.totalorder %s13_s28, %s40_s29  ;;  %p46_p12 = scmp.lt.s32.totalorder %s40_s29, %s40_s29 }
  0x1b   :  { %p47_p13 = por %p46_p12, %p45_p11 }
  0x1d   :  { %p48_p0 = pnand %p47_p13, %p41_p10 }
  0x1f   :  { %51 = shalt.err (!%p48_p0)  }
  0x20   :  { %p53_p1 = scmp.ne.s32.totalorder %s87_s11, %s32_s0  ;;  %p56_p2 = scmp.lt.u32.totalorder %s32_s0, %s32_s0 }
  0x22   :  { %p57_p3 = por %p56_p2, %p34_p7 }
  0x24   :  { %p59_p4 = por %p57_p3, %p33_p6 }
  0x26   :  { %p60_p5 = pnand %p59_p4, %p53_p1 }
  0x28   :  { %63 = shalt.err (!%p60_p5)  }
  0x29   :  { %15 = dma.vmem_to_hbm [thread:$0]  %s13_s28, 512, %s87_s11, [#allocation1] }
  0x2a   :  { %67 = dma.done.wait [#allocation1], 512  }
  0x2b   :  { %68 = vsyncadd [#allocation1], 4294966784 }
  0x2c   :  { %17 = vsyncpa [#allocation1], 1 }

// kernel: rzrzz_forward.1
= control target key start
LH: loop header
LB: loop body
LE: loop exit
PB: predicated region body
PF: predicated region fallthrough
CT: control target
= control target key end

     0   :  { %v596_v0 = vmov 2   ;;  %v597_v1 = vmov 0   ;;  %v9_v3 = vlaneseq  ;;  %v598_v8 = vmov 3   ;;  %s706_s0 = inlined_call_operand.vmem [shape: f32[8,4], index: 0, kind: input, shape index: {}]   ;;  %s707_s1 = inlined_call_operand.vmem [shape: f32[2,8,256], index: 1, kind: output, shape index: {}]  }
   0x1   :  { %585 = vset.pattern.permute.xlu1 %v596_v0  ;;  %583 = vset.pattern.permute.xlu0 %v597_v1  ;;  %v8_v2 = vld [vmem:[%s706_s0] sm:$0xff]  ;;  %v599_v9 = vmov 1  }
   0x2   :  { %74 = vperm.xlu1 %585, %v8_v2   ;;  %62 = vperm.xlu0 %583, %v8_v2   ;;  %v10_v4 = vand.u32 127, %v9_v3 }
   0x4   :  { %v11_v5 = vadd.s32 128, %v10_v4  ;;  %v12_v6 = vand.u32 15, %v10_v4  ;;  %v14_v7 = vshra.s32 %v10_v4, 4 }
   0x6   :  { %586 = vset.pattern.permute.xlu1 %v598_v8  ;;  %584 = vset.pattern.permute.xlu0 %v599_v9  ;;  %v13_v10 = vand.u32 15, %v11_v5  ;;  %v15_v11 = vshra.s32 %v11_v5, 4  ;;  %vm620_vm0 = vcmp.eq.s32.totalorder %v14_v7, %v12_v6  ;;  %v30_v14 = vshra.s32 %v12_v6, 1 }
   0x7   :  { %80 = vperm.xlu1 %586, %v8_v2   ;;  %68 = vperm.xlu0 %584, %v8_v2   ;;  %v40_v16 = vshra.s32 %v12_v6, 2  ;;  %v22_v20 = vand.u32 1, %v12_v6  ;;  %v50_v22 = vshra.s32 %v12_v6, 3 }
   0x8   :  { %vm624_vm1 = vcmp.eq.s32.totalorder %v15_v11, %v13_v10  ;;  %v31_v15 = vshra.s32 %v13_v10, 1  ;;  %v41_v17 = vshra.s32 %v13_v10, 2  ;;  %v32_v18 = vand.u32 1, %v30_v14 }
   0x9   :  { %v23_v21 = vand.u32 1, %v13_v10  ;;  %v51_v23 = vshra.s32 %v13_v10, 3  ;;  %v42_v24 = vand.u32 1, %v40_v16  ;;  %v24_v28 = vcvt.s32.f32 %v22_v20 }
   0xa   :  { %v33_v19 = vand.u32 1, %v31_v15  ;;  %v43_v25 = vand.u32 1, %v41_v17  ;;  %v34_v26 = vcvt.s32.f32 %v32_v18  ;;  %v52_v30 = vand.u32 1, %v50_v22 }
   0xb   :  { %587 = vset.pattern.permute.xlu0 %v598_v8  ;;  %v25_v29 = vcvt.s32.f32 %v23_v21  ;;  %v53_v31 = vand.u32 1, %v51_v23  ;;  %v44_v32 = vcvt.s32.f32 %v42_v24  ;;  %v26_v36 = vmul.f32 2.0, %v24_v28 }
   0xc   :  { %v35_v27 = vcvt.s32.f32 %v33_v19  ;;  %v45_v33 = vcvt.s32.f32 %v43_v25  ;;  %v36_v34 = vmul.f32 2.0, %v34_v26  ;;  %v54_v38 = vcvt.s32.f32 %v52_v30 }
   0xd   :  { %v27_v37 = vmul.f32 2.0, %v25_v29  ;;  %v55_v39 = vcvt.s32.f32 %v53_v31  ;;  %v46_v41 = vmul.f32 2.0, %v44_v32  ;;  %v28_v46 = vsub.f32 1.0, %v26_v36 }
   0xe   :  { %v37_v35 = vmul.f32 2.0, %v35_v27  ;;  %v47_v42 = vmul.f32 2.0, %v45_v33  ;;  %v38_v44 = vsub.f32 1.0, %v36_v34  ;;  %v56_v48 = vmul.f32 2.0, %v54_v38 }
   0xf   :  { %v29_v47 = vsub.f32 1.0, %v27_v37  ;;  %v57_v49 = vmul.f32 2.0, %v55_v39  ;;  %v48_v50 = vsub.f32 1.0, %v46_v41 }
  0x10   :  { %v39_v45 = vsub.f32 1.0, %v37_v35  ;;  %v49_v51 = vsub.f32 1.0, %v47_v42  ;;  %v58_v57 = vsub.f32 1.0, %v56_v48 }
  0x11   :  { %v59_v58 = vsub.f32 1.0, %v57_v49 }
  0x81   :  { %v63_v40 = vpop.permute.xlu0 %62  ;;  %v75_v43 = vpop.permute.xlu1 %74 }
  0x82   :  { %v65_v55 = vmul.f32 %v63_v40, %v28_v46  ;;  %v66_v56 = vmul.f32 %v63_v40, %v29_v47  ;;  %v77_v60 = vmul.f32 %v75_v43, %v48_v50  ;;  %v78_v61 = vmul.f32 %v75_v43, %v49_v51 }
  0x84   :  { %v95_v8 = vmul.f32 %v77_v60, %v65_v55  ;;  %v96_v9 = vmul.f32 %v78_v61, %v66_v56 }
  0x86   :  { %v69_v52 = vpop.permute.xlu0 %68  ;;  %v81_v59 = vpop.permute.xlu1 %80 }
  0x87   :  { %v71_v53 = vmul.f32 %v69_v52, %v38_v44  ;;  %v72_v54 = vmul.f32 %v69_v52, %v39_v45  ;;  %v83_v0 = vmul.f32 %v81_v59, %v58_v57  ;;  %v84_v1 = vmul.f32 %v81_v59, %v59_v58 }
  0x88   :  { %v601_v58 = vmov 2475754826  }
  0x89   :  { %v85_v62 = vadd.f32 %v71_v53, %v65_v55  ;;  %v86_v63 = vadd.f32 %v72_v54, %v66_v56  ;;  %v91_v6 = vmul.f32 %v71_v53, %v65_v55  ;;  %v92_v7 = vmul.f32 %v72_v54, %v66_v56 }
  0x8a   :  { %v99_v14 = vmul.f32 %v83_v0, %v65_v55  ;;  %v100_v15 = vmul.f32 %v84_v1, %v66_v56  ;;  %v103_v20 = vmul.f32 %v77_v60, %v71_v53  ;;  %v104_v21 = vmul.f32 %v78_v61, %v72_v54 }
  0x8b   :  { %v87_v2 = vadd.f32 %v85_v62, %v77_v60  ;;  %v88_v3 = vadd.f32 %v86_v63, %v78_v61  ;;  %v107_v24 = vmul.f32 %v83_v0, %v71_v53  ;;  %v108_v25 = vmul.f32 %v84_v1, %v72_v54 }
  0x8c   :  { %v111_v26 = vmul.f32 %v83_v0, %v77_v60  ;;  %v112_v27 = vmul.f32 %v84_v1, %v78_v61  ;;  %v600_v54 = vmov 683565275   ;;  %v602_v60 = vmov 2131351028  }
  0x8d   :  { %v89_v4 = vadd.f32 %v87_v2, %v83_v0  ;;  %v90_v5 = vadd.f32 %v88_v3, %v84_v1  ;;  %v603_v62 = vmov 2102212464   ;;  %v604_v0 = vmov 920167782  }
  0x8f   :  { %v93_v10 = vadd.f32 %v91_v6, %v89_v4  ;;  %v94_v11 = vadd.f32 %v92_v7, %v90_v5  ;;  %v605_v7 = vmov 1326507024  }
  0x91   :  { %v97_v16 = vadd.f32 %v95_v8, %v93_v10  ;;  %v98_v17 = vadd.f32 %v96_v9, %v94_v11 }
  0x93   :  { %v101_v18 = vadd.f32 %v99_v14, %v97_v16  ;;  %v102_v19 = vadd.f32 %v100_v15, %v98_v17 }
  0x95   :  { %v105_v22 = vadd.f32 %v103_v20, %v101_v18  ;;  %v106_v23 = vadd.f32 %v104_v21, %v102_v19 }
  0x97   :  { %v109_v28 = vadd.f32 %v107_v24, %v105_v22  ;;  %v110_v29 = vadd.f32 %v108_v25, %v106_v23 }
  0x99   :  { %v113_v30 = vadd.f32 %v111_v26, %v109_v28  ;;  %v114_v31 = vadd.f32 %v112_v27, %v110_v29 }
  0x9b   :  { %v628_v32 = vmul.f32 -0.5, %v113_v30  ;;  %v630_v33 = vmul.f32 -0.5, %v114_v31 }
  0x9d   :  { %v117_v34 = vand.u32 2147483647, %v628_v32  ;;  %v120_v35 = vand.u32 2139095040, %v628_v32  ;;  %v223_v36 = vand.u32 2139095040, %v630_v33  ;;  %v220_v39 = vand.u32 2147483647, %v630_v33 }
  0x9f   :  { %v121_v37 = vshrl.u32 %v120_v35, 23  ;;  %v124_v38 = vand.u32 8388607, %v117_v34  ;;  %v224_v40 = vshrl.u32 %v223_v36, 23  ;;  %v640_v45 = vand.u32 8388607, %v220_v39 }
  0xa1   :  { %v546_v41 = vadd.s32 4294967169, %v121_v37  ;;  %v550_v42 = vadd.s32 4294967169, %v224_v40  ;;  %v125_v44 = vor.u32 8388608, %v124_v38  ;;  %v228_v52 = vor.u32 8388608, %v640_v45 }
  0xa3   :  { %v127_v43 = vadd.s32 1, %v546_v41  ;;  %v230_v46 = vadd.s32 1, %v550_v42  ;;  %v642_v51 = vshll.u32 %v125_v44, 8 }
  0xa5   :  { %vm128_vm2 = vcmp.gt.s32.totalorder %v127_v43, 0  ;;  %vm231_vm3 = vcmp.gt.s32.totalorder %v230_v46, 0 }
  0xa6   :  { %v129_v47 = vsel %vm128_vm2, %v127_v43, 0  ;;  %v232_v50 = vsel %vm231_vm3, %v230_v46, 0  ;;  %vm119_vm2 = vcmp.lt.s32.totalorder %v628_v32, 0  ;;  %vm118_vm3 = vcmp.le.f32.partialorder %v117_v34, 0.7853982 }
  0xa7   :  { %v130_v48 = vshrl.u32 %v129_v47, 5  ;;  %v131_v49 = vand.u32 31, %v129_v47  ;;  %v645_v56 = vshrl.u32 %v232_v50, 5  ;;  %v234_v57 = vand.u32 31, %v232_v50 }
  0xa9   :  { %v132_v53 = vsub.s32 32, %v131_v49  ;;  %v134_v55 = vshll.u32 %v600_v54, %v131_v49  ;;  %v137_v59 = vshll.u32 %v601_v58, %v131_v49  ;;  %v140_v61 = vshll.u32 %v602_v60, %v131_v49 }
  0xaa   :  { %v143_v63 = vshll.u32 %v603_v62, %v131_v49  ;;  %v146_v1 = vshll.u32 %v604_v0, %v131_v49  ;;  %vm149_vm4 = vcmp.lt.s32.totalorder %v130_v48, 1  ;;  %vm150_vm5 = vcmp.lt.s32.totalorder %v130_v48, 2 }
  0xab   :  { %v135_v2 = vshrl.u32 %v601_v58, %v132_v53  ;;  %v138_v3 = vshrl.u32 %v602_v60, %v132_v53  ;;  %v141_v4 = vshrl.u32 %v603_v62, %v132_v53  ;;  %v133_v5 = vshrl.u32 %v600_v54, %v132_v53 }
  0xac   :  { %v144_v6 = vshrl.u32 %v604_v0, %v132_v53  ;;  %v147_v8 = vshrl.u32 %v605_v7, %v132_v53  ;;  %v235_v14 = vsub.s32 32, %v234_v57  ;;  %vm151_vm6 = vcmp.lt.s32.totalorder %v130_v48, 3 }
  0xad   :  { %v136_v9 = vor.u32 %v135_v2, %v134_v55  ;;  %v139_v10 = vor.u32 %v138_v3, %v137_v59  ;;  %v142_v11 = vor.u32 %v141_v4, %v140_v61  ;;  %vm152_vm7 = vcmp.lt.s32.totalorder %v130_v48, 4 }
  0xae   :  { %v145_v15 = vor.u32 %v144_v6, %v143_v63  ;;  %v148_v16 = vor.u32 %v147_v8, %v146_v1  ;;  %v237_v24 = vshll.u32 %v600_v54, %v234_v57  ;;  %v238_v27 = vshrl.u32 %v601_v58, %v235_v14 }
  0xaf   :  { %v153_v17 = vsel %vm149_vm4, %v133_v5, %v136_v9  ;;  %v154_v18 = vsel %vm152_vm7, %v142_v11, 2102212464  ;;  %v157_v19 = vsel %vm149_vm4, %v136_v9, %v139_v10  ;;  %v161_v20 = vsel %vm149_vm4, %v139_v10, %v142_v11 }
  0xb0   :  { %v155_v21 = vsel %vm151_vm6, %v139_v10, %v154_v18  ;;  %v158_v22 = vsel %vm152_vm7, %v145_v15, 920167782  ;;  %v162_v23 = vsel %vm152_vm7, %v148_v16, 1326507024  ;;  %v240_v28 = vshll.u32 %v601_v58, %v234_v57 }
  0xb1   :  { %v159_v25 = vsel %vm151_vm6, %v142_v11, %v158_v22  ;;  %v163_v26 = vsel %vm151_vm6, %v145_v15, %v162_v23  ;;  %v156_v29 = vsel %vm150_vm5, %v153_v17, %v155_v21  ;;  %v241_v35 = vshrl.u32 %v602_v60, %v235_v14 }
  0xb2   :  { %v160_v30 = vsel %vm150_vm5, %v157_v19, %v159_v25  ;;  %v164_v31 = vsel %vm150_vm5, %v161_v20, %v163_v26  ;;  %v239_v41 = vor.u32 %v238_v27, %v237_v24  ;;  %v243_v43 = vshll.u32 %v602_v60, %v234_v57 }
  0xb3   :  { %v654_v36 = vmul.u32.u64.low %v642_v51, %v164_v31  ;;  %v655_v37 = vmul.u32.u64.high %v642_v51, %v164_v31, %v654_v36  ;;  %v658_v38 = vmul.u32.u64.low %v642_v51, %v160_v30  ;;  %v659_v40 = vmul.u32.u64.high %v642_v51, %v160_v30, %v658_v38 }
  0xb4   :  { %v242_v42 = vor.u32 %v241_v35, %v240_v28  ;;  %v244_v44 = vshrl.u32 %v603_v62, %v235_v14  ;;  %v246_v45 = vshll.u32 %v603_v62, %v234_v57  ;;  %v247_v46 = vshrl.u32 %v604_v0, %v235_v14 }
  0xb5   :  { %v250_v47 = vshrl.u32 %v605_v7, %v235_v14  ;;  %v268_v49 = vshll.u32 %v228_v52, 8  ;;  %v172_v48 = vmul.u32 %v642_v51, %v156_v29  ;;  %v236_v50 = vshrl.u32 %v600_v54, %v235_v14 }
  0xb6   :  { %v245_v53 = vor.u32 %v244_v44, %v243_v43  ;;  %v249_v55 = vshll.u32 %v604_v0, %v234_v57  ;;  %vm174_vm8 = vc.u32 %v655_v37, %v658_v38  ;;  %v175_v58 = vadd.s32 1, %v659_v40 }
  0xb7   :  { %v248_v59 = vor.u32 %v247_v46, %v246_v45  ;;  %vm252_vm9 = vcmp.lt.s32.totalorder %v645_v56, 1  ;;  %vm254_vm10 = vcmp.lt.s32.totalorder %v645_v56, 3  ;;  %vm255_vm11 = vcmp.lt.s32.totalorder %v645_v56, 4 }
  0xb8   :  { %v251_v61 = vor.u32 %v250_v47, %v249_v55  ;;  %v260_v60 = vsel %vm252_vm9, %v239_v41, %v242_v42  ;;  %v176_v52 = vsel %vm174_vm8, %v175_v58, %v659_v40  ;;  %v257_v62 = vsel %vm255_vm11, %v245_v53, 2102212464 }
  0xb9   :  { %v261_v51 = vsel %vm255_vm11, %v248_v59, 920167782  ;;  %v264_v54 = vsel %vm252_vm9, %v242_v42, %v245_v53  ;;  %v177_v63 = vadd.s32 %v176_v52, %v172_v48  ;;  %vm253_vm12 = vcmp.lt.s32.totalorder %v645_v56, 2 }
  0xba   :  { %v262_v57 = vsel %vm254_vm10, %v245_v53, %v261_v51  ;;  %v265_v0 = vsel %vm255_vm11, %v251_v61, 1326507024  ;;  %v256_v1 = vsel %vm252_vm9, %v236_v50, %v239_v41  ;;  %v258_v2 = vsel %vm254_vm10, %v242_v42, %v257_v62 }
  0xbb   :  { %v263_v3 = vsel %vm253_vm12, %v260_v60, %v262_v57  ;;  %v266_v4 = vsel %vm254_vm10, %v248_v59, %v265_v0  ;;  %v178_v5 = vadd.s32 536870912, %v177_v63  ;;  %v259_v14 = vsel %vm253_vm12, %v256_v1, %v258_v2 }
  0xbc   :  { %v267_v6 = vsel %vm253_vm12, %v264_v54, %v266_v4  ;;  %v669_v7 = vmul.u32.u64.low %v268_v49, %v263_v3  ;;  %v670_v8 = vmul.u32.u64.high %v268_v49, %v263_v3, %v669_v7  ;;  %v275_v56 = vmul.u32 %v268_v49, %v259_v14 }
  0xbd   :  { %v672_v9 = vmul.u32.u64.low %v268_v49, %v267_v6  ;;  %v673_v10 = vmul.u32.u64.high %v268_v49, %v267_v6, %v672_v9  ;;  %v179_v11 = vshrl.u32 %v178_v5, 30  ;;  %v173_v30 = vadd.s32 %v658_v38, %v655_v37 }
  0xbe   :  { %v278_v16 = vadd.s32 1, %v670_v8  ;;  %vm222_vm4 = vcmp.lt.s32.totalorder %v630_v33, 0  ;;  %vm221_vm5 = vcmp.le.f32.partialorder %v220_v39, 0.7853982  ;;  %vm209_vm12 = vweird.f32 %v628_v32 }
  0xbf   :  { %v180_v15 = vshll.u32 %v179_v11, 30  ;;  %vm277_vm13 = vc.u32 %v673_v10, %v669_v7  ;;  %v276_v53 = vadd.s32 %v669_v7, %v673_v10  ;;  %v203_v38 = vsub.s32 4, %v179_v11 }
  0xc0   :  { %v279_v18 = vsel %vm277_vm13, %v278_v16, %v670_v8 }
  0xc1   :  { %v181_v17 = vsub.s32 %v177_v63, %v180_v15  ;;  %v280_v19 = vadd.s32 %v279_v18, %v275_v56  ;;  %v204_v63 = vsel %vm119_vm2, %v203_v38, %v179_v11  ;;  %v606_v56 = vmov 0.0  }
  0xc2   :  { %v206_v1 = vsel %vm118_vm3, 0, %v204_v63 }
  0xc3   :  { %v183_v20 = vsub.s32 0, %v181_v17  ;;  %v281_v21 = vadd.s32 536870912, %v280_v19  ;;  %v420_v6 = vadd.s32 3, %v206_v1  ;;  %v210_v9 = vand.u32 3, %v206_v1 }
  0xc5   :  { %v547_v22 = vmin.u32 %v183_v20, %v181_v17  ;;  %v282_v23 = vshrl.u32 %v281_v21, 30  ;;  %v421_v11 = vand.u32 3, %v420_v6  ;;  %vm212_vm6 = vcmp.eq.s32.totalorder %v210_v9, 0 }
  0xc6   :  { %vm215_vm7 = vcmp.eq.s32.totalorder %v210_v9, 2  ;;  %vm211_vm10 = vcmp.lt.s32.totalorder %v210_v9, 2 }
  0xc7   :  { %v185_v24 = vclz %v547_v22  ;;  %v283_v25 = vshll.u32 %v282_v23, 30  ;;  %v306_v5 = vsub.s32 4, %v282_v23  ;;  %vm426_vm8 = vcmp.eq.s32.totalorder %v421_v11, 2 }
  0xc8   :  { %vm423_vm9 = vcmp.eq.s32.totalorder %v421_v11, 0  ;;  %vm422_vm11 = vcmp.lt.s32.totalorder %v421_v11, 2 }
  0xc9   :  { %v548_v26 = vadd.s32 4294967294, %v185_v24  ;;  %v284_v27 = vsub.s32 %v280_v19, %v283_v25  ;;  %v307_v8 = vsel %vm222_vm4, %v306_v5, %v282_v23 }
  0xca   :  { %v309_v15 = vsel %vm221_vm5, 0, %v307_v8 }
  0xcb   :  { %vm549_vm14 = vcmp.lt.s32.totalorder %v548_v26, 0  ;;  %v286_v29 = vsub.s32 0, %v284_v27  ;;  %v524_v21 = vadd.s32 3, %v309_v15 }
  0xcc   :  { %v188_v28 = vsel %vm549_vm14, 0, %v548_v26 }
  0xcd   :  { %v189_v31 = vsub.s32 32, %v188_v28  ;;  %v193_v35 = vsub.s32 4294967266, %v188_v28  ;;  %v551_v36 = vmin.u32 %v286_v29, %v284_v27  ;;  %v190_v40 = vshll.u32 %v181_v17, %v188_v28 }
  0xce   :  { %v544_v17 = vsel %vm620_vm0, 1.0, %v606_v56  ;;  %v525_v29 = vand.u32 3, %v524_v21 }
  0xcf   :  { %v191_v41 = vshrl.u32 %v173_v30, %v189_v31  ;;  %v194_v42 = vadd.s32 127, %v193_v35  ;;  %v288_v43 = vclz %v551_v36 }
  0xd0   :  { %vm530_vm13 = vcmp.eq.s32.totalorder %v525_v29, 2 }
  0xd1   :  { %v192_v44 = vor.u32 %v191_v41, %v190_v40  ;;  %v195_v45 = vshll.u32 %v194_v42, 23  ;;  %v552_v46 = vadd.s32 4294967294, %v288_v43 }
  0xd3   :  { %v196_v47 = vor.u32 4788187, %v195_v45  ;;  %vm553_vm15 = vcmp.lt.s32.totalorder %v552_v46, 0  ;;  %v199_v48 = vcvt.s32.f32 %v192_v44 }
  0xd4   :  { %v291_v50 = vsel %vm553_vm15, 0, %v552_v46  ;;  %vm527_vm15 = vcmp.eq.s32.totalorder %v525_v29, 0 }
  0xd5   :  { %v197_v49 = vand.u32 2147483647, %v196_v47  ;;  %v292_v55 = vsub.s32 32, %v291_v50  ;;  %v296_v58 = vsub.s32 4294967266, %v291_v50  ;;  %v293_v59 = vshll.u32 %v284_v27, %v291_v50 }
  0xd6   :  { %v313_v27 = vand.u32 3, %v309_v15 }
  0xd7   :  { %v200_v37 = vmul.f32 %v199_v48, %v197_v49  ;;  %v294_v61 = vshrl.u32 %v276_v53, %v292_v55  ;;  %v297_v60 = vadd.s32 127, %v296_v58 }
  0xd8   :  { %vm318_vm0 = vcmp.eq.s32.totalorder %v313_v27, 2  ;;  %vm315_vm14 = vcmp.eq.s32.totalorder %v313_v27, 0 }
  0xd9   :  { %v201_v52 = vxor.u32 2147483648, %v200_v37  ;;  %v295_v62 = vor.u32 %v294_v61, %v293_v59  ;;  %v298_v51 = vshll.u32 %v297_v60, 23 }
  0xdb   :  { %v202_v54 = vsel %vm119_vm2, %v201_v52, %v200_v37  ;;  %v299_v0 = vor.u32 4788187, %v298_v51  ;;  %v302_v3 = vcvt.s32.f32 %v295_v62  ;;  %vm314_vm2 = vcmp.lt.s32.totalorder %v313_v27, 2 }
  0xdc   :  { %v205_v57 = vsel %vm118_vm3, %v628_v32, %v202_v54  ;;  %v545_v32 = vsel %vm624_vm1, 1.0, %v606_v56  ;;  %vm526_vm3 = vcmp.lt.s32.totalorder %v525_v29, 2 }
  0xdd   :  { %588 = vcosq.f32 %v205_v57  ;;  %v300_v2 = vand.u32 2147483647, %v299_v0 }
  0xde   :  { %590 = vsinq.f32 %v205_v57 }
  0xdf   :  { %v303_v4 = vmul.f32 %v302_v3, %v300_v2 }
  0xe1   :  { %v304_v7 = vxor.u32 2147483648, %v303_v4 }
  0xe3   :  { %v305_v34 = vsel %vm222_vm4, %v304_v7, %v303_v4  ;;  %vm312_vm4 = vweird.f32 %v630_v33 }
  0xe4   :  { %v308_v10 = vsel %vm221_vm5, %v630_v33, %v305_v34 }
  0xe5   :  { %592 = vcosq.f32 %v308_v10 }
  0xe6   :  { %594 = vsinq.f32 %v308_v10 }
  0xe7   :  { %v589_v14 = vpop.eup %588 }
  0xe8   :  { %v591_v16 = vpop.eup %590  ;;  %v216_v18 = vxor.u32 2147483648, %v589_v14 }
  0xe9   :  { %v213_v19 = vxor.u32 2147483648, %v591_v16 }
  0xea   :  { %v217_v39 = vsel %vm215_vm7, %v216_v18, %v591_v16  ;;  %v428_v20 = vsel %vm426_vm8, %v216_v18, %v591_v16 }
  0xeb   :  { %v214_v22 = vsel %vm212_vm6, %v589_v14, %v213_v19  ;;  %v425_v23 = vsel %vm423_vm9, %v589_v14, %v213_v19 }
  0xec   :  { %v218_v24 = vsel %vm211_vm10, %v214_v22, %v217_v39  ;;  %v429_v25 = vsel %vm422_vm11, %v425_v23, %v428_v20 }
  0xed   :  { %v219_v26 = vsel %vm209_vm12, nan, %v218_v24  ;;  %v430_v12 = vsel %vm209_vm12, nan, %v429_v25 }
  0xee   :  { %v323_v28 = vmul.f32 %v544_v17, %v219_v26  ;;  %v535_v30 = vmul.f32 %v544_v17, %v430_v12 }
  0xef   :  { %v593_v31 = vpop.eup %592 }
  0xf0   :  { %325 = vst [vmem:[%s707_s1] sm:$0xff] %v323_v28  ;;  %562 = vst [vmem:[%s707_s1 + $0x10] sm:$0xff] %v535_v30  ;;  %v595_v35 = vpop.eup %594  ;;  %v319_v36 = vxor.u32 2147483648, %v593_v31 }
  0xf1   :  { %v316_v40 = vxor.u32 2147483648, %v595_v35 }
  0xf2   :  { %v320_v41 = vsel %vm318_vm0, %v319_v36, %v595_v35  ;;  %v532_v42 = vsel %vm530_vm13, %v319_v36, %v595_v35 }
  0xf3   :  { %v317_v43 = vsel %vm315_vm14, %v593_v31, %v316_v40  ;;  %v529_v44 = vsel %vm527_vm15, %v593_v31, %v316_v40 }
  0xf4   :  { %v321_v45 = vsel %vm314_vm2, %v317_v43, %v320_v41  ;;  %v533_v46 = vsel %vm526_vm3, %v529_v44, %v532_v42 }
  0xf5   :  { %v322_v47 = vsel %vm312_vm4, nan, %v321_v45  ;;  %v534_v49 = vsel %vm312_vm4, nan, %v533_v46 }
  0xf6   :  { %v324_v48 = vmul.f32 %v545_v32, %v322_v47  ;;  %v536_v13 = vmul.f32 %v545_v32, %v534_v49 }
  0xf8   :  { %326 = vst [vmem:[%s707_s1 + $0x8] sm:$0xff] %v324_v48  ;;  %563 = vst [vmem:[%s707_s1 + $0x18] sm:$0xff] %v536_v13 }

</bundles_post_ra>
